<compile_context>
chip_gen: v7x
topology: tpu7x:2x2x1
jax: 0.10.0
libtpu: 0.0.40
codegen_flags: <defaults>
</compile_context>

<pallas_src>
import jax
import jax.numpy as jnp
from jax.experimental import pallas as pl
from jax.experimental.pallas import tpu as pltpu

# ---- small, deterministic config (mirrors the module's shape logic) ----
B = 2          # batch
S = 16         # config.sentence_max_size
E = 32         # config.word_embedding_dimension
C = 32         # conv out channels (hard-coded 32 in the module)
L = 4          # config.label_num
VOCAB = 50     # vocab size of the frozen pretrained embedding

KS = (3, 4, 5, 6)            # conv kernel heights
KW = max(KS)                 # fused im2col window = 6
T_PAD = 16                   # padded time rows (>= S - min(KS) + 1 = 14)
FEAT = len(KS) * C           # 128 pooled features (branch-major)
B_PAD = 8                    # padded batch rows -> unmasked (8,128) tiles
OUT_PAD = 128                # lane-dense logits slab width

# Static row offsets inside the packed weight slab (all multiples of 8,
# so every in-kernel slice is sublane-tile aligned -> no relayout copies).
R_MASK = 0                    # (T_PAD, 128)  time-validity mask
R_WC = R_MASK + T_PAD         # (KW*E, 128)   fused conv weight
R_A1 = R_WC + KW * E          # (128, 128)
R_A2 = R_A1 + FEAT            # (128, 128)
R_A3 = R_A2 + FEAT            # (128, 128)
R_A4 = R_A3 + FEAT            # (128, 128)
W_ROWS = R_A4 + FEAT          # 720 total rows


def textcnn_kernel(x_ref, w_ref, b_ref, o_ref):
    x = x_ref[...]                                   # (B_PAD*T_PAD, KW*E) = (128, 192)
    b = b_ref[...]                                   # (8, 128): bc, c1..c4, 3 zero rows
    mask = w_ref[pl.ds(R_MASK, T_PAD), :]            # (16, 128)
    wc = w_ref[pl.ds(R_WC, KW * E), :]               # (192, 128)

    # Fused conv branches: ONE M=128 MXU matmul, bias + ReLU, validity mask,
    # per-batch max over the 16 time rows.  Masking AFTER the ReLU is exact
    # because every valid ReLU row is >= 0, so zeroed invalid rows never win.
    conv = jnp.dot(x, wc, preferred_element_type=jnp.float32)      # (128, 128)
    conv = jnp.maximum(conv + b[0:1, :], 0.0)
    conv = conv.reshape(B_PAD, T_PAD, FEAT) * mask                 # (8, 16, 128)
    h = jnp.max(conv, axis=1)                                      # (8, 128)

    # Lane-dense 4-layer MLP head (every weight is a zero-padded (128,128)).
    for j, row in enumerate((R_A1, R_A2, R_A3, R_A4)):
        w = w_ref[pl.ds(row, FEAT), :]                             # (128, 128)
        h = jnp.dot(h, w, preferred_element_type=jnp.float32) + b[j + 1:j + 2, :]
        if row != R_A4:
            h = jnp.maximum(h, 0.0)
    o_ref[...] = h                                                 # unmasked (8,128) store


# ---------------------------- host-side packing ----------------------------

def _fuse_conv_params(params):
    """Zero-pad each branch kernel to height KW and concatenate along output
    channels -> (KW*E, 4C) weight + (1, 4C) bias, branch-major columns."""
    w_blocks, b_blocks = [], []
    for k in KS:
        w = params[f"w{k}"]                                   # (k, E, C)
        w = jnp.pad(w, ((0, KW - k), (0, 0), (0, 0)))         # (KW, E, C)
        w_blocks.append(w.reshape(KW * E, C))
        b_blocks.append(params[f"b{k}"])                      # (1, C)
    return jnp.concatenate(w_blocks, axis=1), jnp.concatenate(b_blocks, axis=1)


def _time_mask():
    """(T_PAD, 4C) mask: row t of branch k is valid iff t < S - k + 1."""
    t = jnp.arange(T_PAD, dtype=jnp.int32)[:, None]                  # (16, 1)
    valid = jnp.array([S - k + 1 for k in KS], jnp.int32)[None, :]   # (1, 4)
    return jnp.repeat((t < valid).astype(jnp.float32), C, axis=1)    # (16, 128)


def pack_params(params):
    """Repack all learned tensors into two lane-dense f32 slabs:
    weights (720, 128) and biases (8, 128)."""
    wc, bc = _fuse_conv_params(params)                # (192,128), (1,128)
    mask = _time_mask()                               # (16,128)

    def pad_w(w):                                     # (din, dout) -> (128, 128)
        return jnp.pad(w, ((0, FEAT - w.shape[0]), (0, OUT_PAD - w.shape[1])))

    def pad_b(v):                                     # (1, dout) -> (1, 128)
        return jnp.pad(v, ((0, 0), (0, OUT_PAD - v.shape[1])))

    w_slab = jnp.concatenate(
        [mask, wc, pad_w(params["a1"]), pad_w(params["a2"]),
         pad_w(params["a3"]), pad_w(params["a4"])], axis=0)        # (720, 128)
    b_slab = jnp.concatenate(
        [bc, pad_b(params["c1"]), pad_b(params["c2"]),
         pad_b(params["c3"]), pad_b(params["c4"]),
         jnp.zeros((3, OUT_PAD), jnp.float32)], axis=0)            # (8, 128)
    return w_slab, b_slab


def _im2col(tokens, emb_table):
    """Frozen-embedding gather that directly produces the lane-dense im2col
    slab (B_PAD*T_PAD, KW*E) in one gather -- no slice/concat/pad HLO chain.
    Window slots past the sentence end index a zero row (they only feed
    positions that get masked after the ReLU anyway)."""
    bsz = tokens.shape[0]
    emb_z = jnp.concatenate([emb_table.astype(jnp.float32),
                             jnp.zeros((1, E), jnp.float32)], axis=0)
    pad_id = emb_table.shape[0]
    tok = jnp.concatenate(
        [tokens, jnp.full((bsz, KW - 1), pad_id, tokens.dtype)], axis=1)   # (B, S+5)
    win = jnp.arange(T_PAD)[:, None] + jnp.arange(KW)[None, :]             # (16, 6)
    xc = emb_z[tok[:, win]]                            # (B, 16, 6, E)
    xc = xc.reshape(bsz, T_PAD, KW * E)                # (B, 16, 192)
    xc = jnp.pad(xc, ((0, B_PAD - bsz), (0, 0), (0, 0)))
    return xc.reshape(B_PAD * T_PAD, KW * E)           # (128, 192)


def textcnn_forward(tokens, emb_table, params):
    # Token padding / frozen embedding lookup is host-side glue feeding the kernel.
    xc = _im2col(tokens, emb_table)                    # (128, 192)
    w_slab, b_slab = pack_params(params)               # (720, 128), (8, 128)

    out = pl.pallas_call(
        textcnn_kernel,
        grid=(1,),   # single step: at B=2 per-step overhead exceeds the work,
                     # so do NOT shard across TensorCores (per perf review).
        in_specs=[
            pl.BlockSpec((B_PAD * T_PAD, KW * E), lambda i: (0, 0)),
            pl.BlockSpec((W_ROWS, OUT_PAD), lambda i: (0, 0)),
            pl.BlockSpec((B_PAD, OUT_PAD), lambda i: (0, 0)),
        ],
        out_specs=pl.BlockSpec((B_PAD, OUT_PAD), lambda i: (0, 0)),
        out_shape=jax.ShapeDtypeStruct((B_PAD, OUT_PAD), jnp.float32),
        compiler_params=pltpu.CompilerParams(
            dimension_semantics=("arbitrary",)),
    )(xc, w_slab, b_slab)
    return out[:tokens.shape[0], :L]                   # matches x.view(-1, label_num)


# ------------------------------ params / ref -------------------------------

def init_params(key):
    ks = jax.random.split(key, 20)
    p = {}
    i = 0
    # Conv weights stored as (k, E, C): W[dk, e, c] == torch W[c, 0, dk, e]
    for k in KS:
        p[f"w{k}"] = 0.1 * jax.random.normal(ks[i], (k, E, C), jnp.float32); i += 1
        p[f"b{k}"] = 0.1 * jax.random.normal(ks[i], (1, C), jnp.float32); i += 1
    # Linear weights stored as (in, out) == torch W.T
    dims = [(FEAT, 64), (64, 32), (32, 16), (16, L)]
    for j, (din, dout) in enumerate(dims, start=1):
        p[f"a{j}"] = 0.1 * jax.random.normal(ks[i], (din, dout), jnp.float32); i += 1
        p[f"c{j}"] = 0.1 * jax.random.normal(ks[i], (1, dout), jnp.float32); i += 1
    # PyTorch flattens pooled features channel-major (index = c*4 + branch);
    # the kernel produces branch-major (index = branch*32 + c).  Permute
    # linear1's input rows so the kernel result matches torch ordering.
    # TODO(synk): add a torch-vs-kernel parity test with real checkpoint weights
    # to exercise this permutation (random init cannot catch a wrong perm).
    idx = jnp.arange(FEAT)
    perm = (idx % C) * len(KS) + idx // C
    p["a1"] = p["a1"][perm, :]
    return p


def textcnn_reference(tokens, emb_table, params):
    """Pure-JAX mirror of the torch forward (branch-major feature order,
    params['a1'] already permuted to match)."""
    x = emb_table[tokens].astype(jnp.float32)                    # (B, S, E)
    feats = []
    for k in KS:
        w = params[f"w{k}"]                                      # (k, E, C)
        tt = S - k + 1
        win = jnp.stack([x[:, t:t + k, :] for t in range(tt)], axis=1)   # (B, tt, k, E)
        conv = jnp.einsum('btke,kec->btc', win, w) + params[f"b{k}"]     # (B, tt, C)
        feats.append(jnp.max(jax.nn.relu(conv), axis=1))                 # (B, C)
    h = jnp.concatenate(feats, axis=-1)                          # (B, 128)
    for j in range(1, 5):
        h = h @ params[f"a{j}"] + params[f"c{j}"]
        if j < 4:
            h = jax.nn.relu(h)
    return h


if __name__ == "__main__":
    key = jax.random.PRNGKey(0)
    k_tok, k_emb, k_par = jax.random.split(key, 3)

    # Token ids already padded to sentence_max_size (the list/pad_sequence
    # preprocessing of the module is host-side glue).
    tokens = jax.random.randint(k_tok, (B, S), 0, VOCAB, dtype=jnp.int32)
    emb_table = 0.1 * jax.random.normal(k_emb, (VOCAB, E), jnp.float32)
    params = init_params(k_par)

    logits = textcnn_forward(tokens, emb_table, params)
    jax.block_until_ready(logits)
    assert logits.shape == (B, L) and logits.dtype == jnp.float32

    ref = textcnn_reference(tokens, emb_table, params)
    assert jnp.allclose(logits, ref, atol=2e-2, rtol=2e-2), (
        "max abs diff = %f" % float(jnp.max(jnp.abs(logits - ref))))
    print("KERNEL_OK")
</pallas_src>

<mosaic_0001>
module attributes {stable_mosaic.version = 11 : i64} {
  func.func @textcnn_kernel(%arg0: i32, %arg1: memref<128x192xf32, #tpu.memory_space<vmem>>, %arg2: memref<720x128xf32, #tpu.memory_space<vmem>>, %arg3: memref<8x128xf32, #tpu.memory_space<vmem>>, %arg4: memref<8x128xf32, #tpu.memory_space<vmem>>) attributes {dimension_semantics = [#tpu.dimension_semantics<arbitrary>], iteration_bounds = array<i64: 1>, scalar_prefetch = 0 : i64, scratch_operands = 0 : i64, tpu.core_type = #tpu.core_type<tc>, window_params = [{pipeline_mode = #tpu.pipeline_mode<synchronous>, transform_indices = @transform_0, window_bounds = array<i64: 128, 192>}, {pipeline_mode = #tpu.pipeline_mode<synchronous>, transform_indices = @transform_1, window_bounds = array<i64: 720, 128>}, {pipeline_mode = #tpu.pipeline_mode<synchronous>, transform_indices = @transform_2, window_bounds = array<i64: 8, 128>}, {pipeline_mode = #tpu.pipeline_mode<synchronous>, transform_indices = @transform_3, window_bounds = array<i64: 8, 128>}]} {
    %c0 = arith.constant 0 : index
    %c0_0 = arith.constant 0 : index
    %0 = vector.load %arg1[%c0, %c0_0] : memref<128x192xf32, #tpu.memory_space<vmem>>, vector<128x192xf32>
    %c0_1 = arith.constant 0 : index
    %c0_2 = arith.constant 0 : index
    %1 = vector.load %arg3[%c0_1, %c0_2] : memref<8x128xf32, #tpu.memory_space<vmem>>, vector<8x128xf32>
    %c0_3 = arith.constant 0 : index
    %c0_4 = arith.constant 0 : index
    %2 = vector.load %arg2[%c0_3, %c0_4] : memref<720x128xf32, #tpu.memory_space<vmem>>, vector<16x128xf32>
    %c16 = arith.constant 16 : index
    %c0_5 = arith.constant 0 : index
    %3 = vector.load %arg2[%c16, %c0_5] : memref<720x128xf32, #tpu.memory_space<vmem>>, vector<192x128xf32>
    %cst = arith.constant dense<0.000000e+00> : vector<128x128xf32>
    %4 = tpu.matmul %0, %3, %cst {dimension_numbers = #tpu.dot_dimension_numbers<[1], [0], [0], [1], [0, 0, 1, 1], [], []>} : vector<128x192xf32>, vector<192x128xf32>, vector<128x128xf32> -> vector<128x128xf32>
    %5 = vector.extract_strided_slice %1 {offsets = [0, 0], sizes = [1, 128], strides = [1, 1]} : vector<8x128xf32> to vector<1x128xf32>
    %6 = vector.broadcast %5 : vector<1x128xf32> to vector<128x128xf32>
    %7 = arith.addf %4, %6 : vector<128x128xf32>
    %cst_6 = arith.constant 0.000000e+00 : f32
    %8 = vector.broadcast %cst_6 : f32 to vector<128x128xf32>
    %9 = arith.maximumf %7, %8 : vector<128x128xf32>
    %10 = vector.shape_cast %9 : vector<128x128xf32> to vector<8x16x128xf32>
    %11 = vector.shape_cast %2 : vector<16x128xf32> to vector<1x16x128xf32>
    %12 = vector.broadcast %11 : vector<1x16x128xf32> to vector<8x16x128xf32>
    %13 = arith.mulf %10, %12 : vector<8x16x128xf32>
    %cst_7 = arith.constant dense<0xFF800000> : vector<8x128xf32>
    %14 = vector.multi_reduction <maximumf>, %13, %cst_7 [1] : vector<8x16x128xf32> to vector<8x128xf32>
    %c208 = arith.constant 208 : index
    %c0_8 = arith.constant 0 : index
    %15 = vector.load %arg2[%c208, %c0_8] : memref<720x128xf32, #tpu.memory_space<vmem>>, vector<128x128xf32>
    %cst_9 = arith.constant dense<0.000000e+00> : vector<8x128xf32>
    %16 = tpu.matmul %14, %15, %cst_9 {dimension_numbers = #tpu.dot_dimension_numbers<[1], [0], [0], [1], [0, 0, 1, 1], [], []>} : vector<8x128xf32>, vector<128x128xf32>, vector<8x128xf32> -> vector<8x128xf32>
    %17 = vector.extract_strided_slice %1 {offsets = [1, 0], sizes = [1, 128], strides = [1, 1]} : vector<8x128xf32> to vector<1x128xf32>
    %18 = vector.broadcast %17 : vector<1x128xf32> to vector<8x128xf32>
    %19 = arith.addf %16, %18 : vector<8x128xf32>
    %cst_10 = arith.constant 0.000000e+00 : f32
    %20 = vector.broadcast %cst_10 : f32 to vector<8x128xf32>
    %21 = arith.maximumf %19, %20 : vector<8x128xf32>
    %c336 = arith.constant 336 : index
    %c0_11 = arith.constant 0 : index
    %22 = vector.load %arg2[%c336, %c0_11] : memref<720x128xf32, #tpu.memory_space<vmem>>, vector<128x128xf32>
    %cst_12 = arith.constant dense<0.000000e+00> : vector<8x128xf32>
    %23 = tpu.matmul %21, %22, %cst_12 {dimension_numbers = #tpu.dot_dimension_numbers<[1], [0], [0], [1], [0, 0, 1, 1], [], []>} : vector<8x128xf32>, vector<128x128xf32>, vector<8x128xf32> -> vector<8x128xf32>
    %24 = vector.extract_strided_slice %1 {offsets = [2, 0], sizes = [1, 128], strides = [1, 1]} : vector<8x128xf32> to vector<1x128xf32>
    %25 = vector.broadcast %24 : vector<1x128xf32> to vector<8x128xf32>
    %26 = arith.addf %23, %25 : vector<8x128xf32>
    %cst_13 = arith.constant 0.000000e+00 : f32
    %27 = vector.broadcast %cst_13 : f32 to vector<8x128xf32>
    %28 = arith.maximumf %26, %27 : vector<8x128xf32>
    %c464 = arith.constant 464 : index
    %c0_14 = arith.constant 0 : index
    %29 = vector.load %arg2[%c464, %c0_14] : memref<720x128xf32, #tpu.memory_space<vmem>>, vector<128x128xf32>
    %cst_15 = arith.constant dense<0.000000e+00> : vector<8x128xf32>
    %30 = tpu.matmul %28, %29, %cst_15 {dimension_numbers = #tpu.dot_dimension_numbers<[1], [0], [0], [1], [0, 0, 1, 1], [], []>} : vector<8x128xf32>, vector<128x128xf32>, vector<8x128xf32> -> vector<8x128xf32>
    %31 = vector.extract_strided_slice %1 {offsets = [3, 0], sizes = [1, 128], strides = [1, 1]} : vector<8x128xf32> to vector<1x128xf32>
    %32 = vector.broadcast %31 : vector<1x128xf32> to vector<8x128xf32>
    %33 = arith.addf %30, %32 : vector<8x128xf32>
    %cst_16 = arith.constant 0.000000e+00 : f32
    %34 = vector.broadcast %cst_16 : f32 to vector<8x128xf32>
    %35 = arith.maximumf %33, %34 : vector<8x128xf32>
    %c592 = arith.constant 592 : index
    %c0_17 = arith.constant 0 : index
    %36 = vector.load %arg2[%c592, %c0_17] : memref<720x128xf32, #tpu.memory_space<vmem>>, vector<128x128xf32>
    %cst_18 = arith.constant dense<0.000000e+00> : vector<8x128xf32>
    %37 = tpu.matmul %35, %36, %cst_18 {dimension_numbers = #tpu.dot_dimension_numbers<[1], [0], [0], [1], [0, 0, 1, 1], [], []>} : vector<8x128xf32>, vector<128x128xf32>, vector<8x128xf32> -> vector<8x128xf32>
    %38 = vector.extract_strided_slice %1 {offsets = [4, 0], sizes = [1, 128], strides = [1, 1]} : vector<8x128xf32> to vector<1x128xf32>
    %39 = vector.broadcast %38 : vector<1x128xf32> to vector<8x128xf32>
    %40 = arith.addf %37, %39 : vector<8x128xf32>
    %c0_19 = arith.constant 0 : index
    %c0_20 = arith.constant 0 : index
    %41 = vector.load %arg4[%c0_19, %c0_20] : memref<8x128xf32, #tpu.memory_space<vmem>>, vector<8x128xf32>
    tpu.vector_store %arg4[%c0_19, %c0_20], %40 {strides = array<i32>} : memref<8x128xf32, #tpu.memory_space<vmem>>, vector<8x128xf32>,
    return
  }
  func.func @transform_0(%arg0: i32) -> (i32, i32) {
    %c0_i32 = arith.constant 0 : i32
    %c0_i32_0 = arith.constant 0 : i32
    %c0_i32_1 = arith.constant 0 : i32
    return %c0_i32, %c0_i32_0 : i32, i32
  }
  func.func @transform_1(%arg0: i32) -> (i32, i32) {
    %c0_i32 = arith.constant 0 : i32
    %c0_i32_0 = arith.constant 0 : i32
    %c0_i32_1 = arith.constant 0 : i32
    return %c0_i32, %c0_i32_0 : i32, i32
  }
  func.func @transform_2(%arg0: i32) -> (i32, i32) {
    %c0_i32 = arith.constant 0 : i32
    %c0_i32_0 = arith.constant 0 : i32
    %c0_i32_1 = arith.constant 0 : i32
    return %c0_i32, %c0_i32_0 : i32, i32
  }
  func.func @transform_3(%arg0: i32) -> (i32, i32) {
    %c0_i32 = arith.constant 0 : i32
    %c0_i32_0 = arith.constant 0 : i32
    %c0_i32_1 = arith.constant 0 : i32
    return %c0_i32, %c0_i32_0 : i32, i32
  }
}

</mosaic_0001>

<bundles_post_ra>
// kernel: tpu_custom_call.1
= control target key start
LH: loop header
LB: loop body
LE: loop exit
PB: predicated region body
PF: predicated region fallthrough
CT: control target
= control target key end

     0   :  { %8 = vsyncpa [#allocation3], 0  ;;  %s1457_s0 = inlined_call_operand.vmem [shape: f32[128,192], index: 0, kind: input, shape index: {}]   ;;  %s1458_s1 = inlined_call_operand.hbm [shape: f32[720,128], index: 1, kind: input, shape index: {}]   ;;  %s1459_s2 = inlined_call_operand.vmem [shape: f32[8,128], index: 2, kind: input, shape index: {}]   ;;  %s1460_s3 = inlined_call_operand.hbm [shape: f32[8,128], index: 3, kind: output, shape index: {}]  }
   0x1   :  { %9 = vsyncpa [#allocation4], 0  ;;  %s1187_s12 = smov [#allocation2]   ;;  %s1139_s16 = scalar_lea.hbm %s1458_s1, 11520 }
   0x2   :  { %s17_s13 = sshll.u32 %s1187_s12, 4  ;;  %p1140_p0 = scmp.ne.s32.totalorder %s1458_s1, %s1139_s16  ;;  %s18_s13 = int_to_ptr.vmem [resolvable:$true] %s17_s13 }
   0x3   :  { %p1143_p1 = scmp.lt.u32.totalorder %s1139_s16, %s1458_s1 }
   0x5   :  { %p1145_p2 = pnand %p1143_p1, %p1140_p0 }
   0x7   :  { %1148 = shalt.err (!%p1145_p2)
}
   0x8   :  { %s1149_s21 = scalar_lea.vmem %s18_s13, 11520  ;;  %p1154_p4 = scmp.lt.s32.totalorder %s18_s13, %s18_s13 }
   0x9   :  { %p1150_p3 = scmp.ne.s32.totalorder %s18_s13, %s1149_s21  ;;  %p1155_p5 = scmp.lt.s32.totalorder %s1149_s21, %s1149_s21 }
   0xb   :  { %p1156_p6 = por %p1155_p5, %p1154_p4 }
   0xd   :  { %p1157_p7 = pnand %p1156_p6, %p1150_p3 }
   0xf   :  { %1160 = shalt.err (!%p1157_p7)
}
  0x10   :  { %s1188_s22 = smov 128   ;;  %s1189_s23 = smov 8  }
  0x11   :  { %23 = dma.hbm_to_vmem [thread:$0]  %s1458_s1, 11520, %s18_s13, [#allocation3], %s1188_s22, %s1188_s22, %s1189_s23  }
  0x12   :  { %1183 = dma.done.wait [#allocation3], 11520  }
  0x13   :  { %1184 = vsyncadd [#allocation3], 4294955776  ;;  %v1190_v0 = vmov 0.0|0.0   ;;  %v64_v1 = vld [vmem:[#allocation2 + $0x10] sm:$0xff]  ;;  %v65_v2 = vld [vmem:[#allocation2 + $0x18] sm:$0xff]  ;;  %vm92_vm0 = vcmask 523264  }
  0x14   :  { %1000 = vmatprep.subr.bf16.mxu0 %v1190_v0  ;;  %1036 = vmatprep.subr.bf16.mxu1 %v1190_v0  ;;  %v66_v3 = vld [vmem:[#allocation2 + $0x20] sm:$0xff]  ;;  %v1001_v4 = vpack.c.bf16 %v65_v2, %v64_v1  ;;  %v67_v5 = vld [vmem:[#allocation2 + $0x28] sm:$0xff]  ;;  %v68_v7 = vld [vmem:[#allocation2 + $0x30] sm:$0xff]  ;;  %vm1191_vm1 = vmmov 0   ;;  %vm402_vm2 = vcmask 1041409   ;;  %vm404_vm3 = vcmask 1042434  }
  0x15   :  { %v1004_v6 = vpack.c.bf16 %v67_v5, %v66_v3  ;;  %v69_v8 = vld [vmem:[#allocation2 + $0x38] sm:$0xff]  ;;  %v70_v10 = vld [vmem:[#allocation2 + $0x40] sm:$0xff]  ;;  %v71_v11 = vld [vmem:[#allocation2 + $0x48] sm:$0xff]  ;;  %vm406_vm4 = vcmask 1043459   ;;  %vm408_vm5 = vcmask 1044484   ;;  %vm410_vm6 = vcmask 1045509  }
  0x16   :  { %1002 = vmatpush1.bf16.msra.mxu0 %v1001_v4  ;;  %v1007_v9 = vpack.c.bf16 %v69_v8, %v68_v7  ;;  %v30_v12 = vld [vmem:[%s1457_s0 + $0x8] sm:$0xff]  ;;  %v1010_v13 = vpack.c.bf16 %v71_v11, %v70_v10  ;;  %v72_v14 = vld [vmem:[#allocation2 + $0x50] sm:$0xff]  ;;  %v73_v15 = vld [vmem:[#allocation2 + $0x58] sm:$0xff]  ;;  %vm412_vm7 = vcmask 1046534   ;;  %vm414_vm8 = vcmask 1047559  }
  0x17   :  { %1003 = vmatprep.subr.bf16.mxu0 %v1190_v0  ;;  %776 = vmatprep.mubr.msk.f32.mxu0 %vm92_vm0, %v30_v12  ;;  %v1013_v16 = vpack.c.bf16 %v73_v15, %v72_v14  ;;  %v74_v17 = vld [vmem:[#allocation2 + $0x60] sm:$0xff]  ;;  %v75_v18 = vld [vmem:[#allocation2 + $0x68] sm:$0xff]  ;;  %v76_v20 = vld [vmem:[#allocation2 + $0x70] sm:$0xff] }
  0x18   :  { %v1016_v19 = vpack.c.bf16 %v75_v18, %v74_v17  ;;  %v77_v21 = vld [vmem:[#allocation2 + $0x78] sm:$0xff]  ;;  %v78_v23 = vld [vmem:[#allocation2 + $0x80] sm:$0xff]  ;;  %v79_v24 = vld [vmem:[#allocation2 + $0x88] sm:$0xff] }
  0x19   :  { %v1019_v22 = vpack.c.bf16 %v77_v21, %v76_v20  ;;  %v1022_v25 = vpack.c.bf16 %v79_v24, %v78_v23  ;;  %v80_v26 = vld [vmem:[#allocation2 + $0x90] sm:$0xff]  ;;  %v81_v27 = vld [vmem:[#allocation2 + $0x98] sm:$0xff]  ;;  %v82_v29 = vld [vmem:[#allocation2 + $0xa0] sm:$0xff] }
  0x1a   :  { %1005 = vmatpush1.bf16.msra.mxu0 %v1004_v6  ;;  %v1025_v28 = vpack.c.bf16 %v81_v27, %v80_v26  ;;  %v83_v30 = vld [vmem:[#allocation2 + $0xa8] sm:$0xff]  ;;  %v84_v32 = vld [vmem:[#allocation2 + $0xb0] sm:$0xff]  ;;  %v85_v33 = vld [vmem:[#allocation2 + $0xb8] sm:$0xff] }
  0x1b   :  { %1006 = vmatprep.subr.bf16.mxu0 %v1190_v0  ;;  %v1028_v31 = vpack.c.bf16 %v83_v30, %v82_v29  ;;  %v1031_v34 = vpack.c.bf16 %v85_v33, %v84_v32  ;;  %v86_v35 = vld [vmem:[#allocation2 + $0xc0] sm:$0xff]  ;;  %v87_v36 = vld [vmem:[#allocation2 + $0xc8] sm:$0xff]  ;;  %v32_v39 = vld [vmem:[%s1457_s0 + $0x18] sm:$0xff]  ;;  %v1192_v29 = vmov 0.0  }
  0x1c   :  { %v1034_v37 = vpack.c.bf16 %v87_v36, %v86_v35  ;;  %v29_v38 = vld [vmem:[%s1457_s0] sm:$0xff]  ;;  %v31_v40 = vld [vmem:[%s1457_s0 + $0x10] sm:$0xff]  ;;  %v34_v41 = vld [vmem:[%s1457_s0 + $0x28] sm:$0xff]  ;;  %892 = vmatprep.mubr.msk.f32.mxu1 %vm1191_vm1, %v1192_v29 }
  0x1d   :  { %v33_v42 = vld [vmem:[%s1457_s0 + $0x20] sm:$0xff]  ;;  %v36_v43 = vld [vmem:[%s1457_s0 + $0x38] sm:$0xff]  ;;  %v35_v44 = vld [vmem:[%s1457_s0 + $0x30] sm:$0xff] }
  0x1e   :  { %1008 = vmatpush1.bf16.msra.mxu0 %v1007_v9  ;;  %v38_v45 = vld [vmem:[%s1457_s0 + $0x48] sm:$0xff]  ;;  %v37_v46 = vld [vmem:[%s1457_s0 + $0x40] sm:$0xff]  ;;  %v40_v47 = vld [vmem:[%s1457_s0 + $0x58] sm:$0xff] }
  0x1f   :  { %1009 = vmatprep.subr.bf16.mxu0 %v1190_v0  ;;  %v39_v48 = vld [vmem:[%s1457_s0 + $0x50] sm:$0xff]  ;;  %v42_v49 = vld [vmem:[%s1457_s0 + $0x68] sm:$0xff]  ;;  %v41_v50 = vld [vmem:[%s1457_s0 + $0x60] sm:$0xff] }
  0x20   :  { %v44_v51 = vld [vmem:[%s1457_s0 + $0x78] sm:$0xff]  ;;  %v43_v52 = vld [vmem:[%s1457_s0 + $0x70] sm:$0xff]  ;;  %v46_v53 = vld [vmem:[%s1457_s0 + $0x88] sm:$0xff] }
  0x21   :  { %v45_v54 = vld [vmem:[%s1457_s0 + $0x80] sm:$0xff]  ;;  %v48_v55 = vld [vmem:[%s1457_s0 + $0x98] sm:$0xff]  ;;  %v47_v56 = vld [vmem:[%s1457_s0 + $0x90] sm:$0xff] }
  0x22   :  { %1011 = vmatpush1.bf16.msra.mxu0 %v1010_v13  ;;  %v50_v57 = vld [vmem:[%s1457_s0 + $0xa8] sm:$0xff]  ;;  %v49_v58 = vld [vmem:[%s1457_s0 + $0xa0] sm:$0xff]  ;;  %v52_v59 = vld [vmem:[%s1457_s0 + $0xb8] sm:$0xff] }
  0x23   :  { %1012 = vmatprep.subr.bf16.mxu0 %v1190_v0  ;;  %v51_v60 = vld [vmem:[%s1457_s0 + $0xb0] sm:$0xff]  ;;  %v54_v61 = vld [vmem:[%s1457_s0 + $0xc8] sm:$0xff]  ;;  %v53_v62 = vld [vmem:[%s1457_s0 + $0xc0] sm:$0xff] }
  0x24   :  { %v56_v63 = vld [vmem:[%s1457_s0 + $0xd8] sm:$0xff]  ;;  %v55_v1 = vld [vmem:[%s1457_s0 + $0xd0] sm:$0xff]  ;;  %v58_v2 = vld [vmem:[%s1457_s0 + $0xe8] sm:$0xff] }
  0x25   :  { %v57_v3 = vld [vmem:[%s1457_s0 + $0xe0] sm:$0xff]  ;;  %v60_v4 = vld [vmem:[%s1457_s0 + $0xf8] sm:$0xff]  ;;  %v59_v5 = vld [vmem:[%s1457_s0 + $0xf0] sm:$0xff] }
  0x26   :  { %1014 = vmatpush1.bf16.msra.mxu0 %v1013_v16  ;;  %v374_v6 = vld [vmem:[#allocation2 + $0xd0] sm:$0xff]  ;;  %v375_v7 = vld [vmem:[#allocation2 + $0xd8] sm:$0xff]  ;;  %v376_v9 = vld [vmem:[#allocation2 + $0xe0] sm:$0xff] }
  0x27   :  { %1015 = vmatprep.subr.bf16.mxu0 %v1190_v0  ;;  %v1037_v8 = vpack.c.bf16 %v375_v7, %v374_v6  ;;  %v377_v10 = vld [vmem:[#allocation2 + $0xe8] sm:$0xff]  ;;  %v378_v12 = vld [vmem:[#allocation2 + $0xf0] sm:$0xff]  ;;  %v379_v13 = vld [vmem:[#allocation2 + $0xf8] sm:$0xff] }
  0x28   :  { %v1040_v11 = vpack.c.bf16 %v377_v10, %v376_v9  ;;  %v1043_v14 = vpack.c.bf16 %v379_v13, %v378_v12  ;;  %v380_v15 = vld [vmem:[#allocation2 + $0x100] sm:$0xff]  ;;  %v381_v16 = vld [vmem:[#allocation2 + $0x108] sm:$0xff]  ;;  %v382_v18 = vld [vmem:[#allocation2 + $0x110] sm:$0xff] }
  0x29   :  { %1038 = vmatpush3.bf16.msra.mxu1 %v1037_v8  ;;  %v1046_v17 = vpack.c.bf16 %v381_v16, %v380_v15  ;;  %v384_v21 = vld [vmem:[#allocation2 + $0x120] sm:$0xff]  ;;  %v386_v24 = vld [vmem:[#allocation2 + $0x130] sm:$0xff] }
  0x2a   :  { %1017 = vmatpush1.bf16.msra.mxu0 %v1016_v19  ;;  %1039 = vmatprep.subr.bf16.mxu1 %v1190_v0  ;;  %v383_v19 = vld [vmem:[#allocation2 + $0x118] sm:$0xff]  ;;  %v388_v27 = vld [vmem:[#allocation2 + $0x140] sm:$0xff] }
  0x2b   :  { %1018 = vmatprep.subr.bf16.mxu0 %v1190_v0  ;;  %v1049_v20 = vpack.c.bf16 %v383_v19, %v382_v18 }
  0x2d   :  { %1041 = vmatpush3.bf16.msra.mxu1 %v1040_v11 }
  0x2e   :  { %1020 = vmatpush1.bf16.msra.mxu0 %v1019_v22  ;;  %1042 = vmatprep.subr.bf16.mxu1 %v1190_v0  ;;  %v385_v22 = vld [vmem:[#allocation2 + $0x128] sm:$0xff] }
  0x2f   :  { %1021 = vmatprep.subr.bf16.mxu0 %v1190_v0  ;;  %v1052_v23 = vpack.c.bf16 %v385_v22, %v384_v21 }
  0x31   :  { %1044 = vmatpush3.bf16.msra.mxu1 %v1043_v14 }
  0x32   :  { %1023 = vmatpush1.bf16.msra.mxu0 %v1022_v25  ;;  %1045 = vmatprep.subr.bf16.mxu1 %v1190_v0  ;;  %v387_v25 = vld [vmem:[#allocation2 + $0x138] sm:$0xff] }
  0x33   :  { %1024 = vmatprep.subr.bf16.mxu0 %v1190_v0  ;;  %v1055_v26 = vpack.c.bf16 %v387_v25, %v386_v24 }
  0x35   :  { %1047 = vmatpush3.bf16.msra.mxu1 %v1046_v17 }
  0x36   :  { %1026 = vmatpush1.bf16.msra.mxu0 %v1025_v28  ;;  %1048 = vmatprep.subr.bf16.mxu1 %v1190_v0  ;;  %v389_v28 = vld [vmem:[#allocation2 + $0x148] sm:$0xff] }
  0x37   :  { %1027 = vmatprep.subr.bf16.mxu0 %v1190_v0  ;;  %v1058_v30 = vpack.c.bf16 %v389_v28, %v388_v27 }
  0x39   :  { %1050 = vmatpush3.bf16.msra.mxu1 %v1049_v20 }
  0x3a   :  { %1029 = vmatpush1.bf16.msra.mxu0 %v1028_v31  ;;  %1051 = vmatprep.subr.bf16.mxu1 %v1190_v0  ;;  %v88_v31 = vlaneseq }
  0x3b   :  { %1030 = vmatprep.subr.bf16.mxu0 %v1190_v0 }
  0x3c   :  { %v1364_v32 = vshrl.u32 %v88_v31, 7 }
  0x3d   :  { %1053 = vmatpush3.bf16.msra.mxu1 %v1052_v23 }
  0x3e   :  { %1032 = vmatpush1.bf16.msra.mxu0 %v1031_v34  ;;  %1054 = vmatprep.subr.bf16.mxu1 %v1190_v0  ;;  %v90_v33 = vsub.s32 0, %v1364_v32  ;;  %v1370_v34 = vld [vmem:[%s1459_s2] sm:$0xff]  ;;  %s1193_s2 = smov [#allocation5]  }
  0x3f   :  { %1033 = vmatprep.subr.bf16.mxu0 %v1190_v0  ;;  %s767_s7 = sshll.u32 %s1193_s2, 4  ;;  %s768_s7 = int_to_ptr.vmem [resolvable:$true] %s767_s7 }
  0x40   :  { %v1373_v35 = vrot.slane %v1370_v34, %v90_v33  ;;  %s1161_s8 = scalar_lea.vmem %s768_s7, 128  ;;  %p1166_p9 = scmp.lt.s32.totalorder %s768_s7, %s768_s7 }
  0x41   :  { %1056 = vmatpush3.bf16.msra.mxu1 %v1055_v26  ;;  %p1162_p8 = scmp.ne.s32.totalorder %s768_s7, %s1161_s8  ;;  %p1167_p10 = scmp.lt.s32.totalorder %s1161_s8, %s1161_s8 }
  0x42   :  { %1035 = vmatpush1.bf16.msra.mxu0 %v1034_v37  ;;  %1057 = vmatprep.subr.bf16.mxu1 %v1190_v0 }
  0x43   :  { %1108 = vmatprep.subr.bf16.mxu0 %v1190_v0  ;;  %p1168_p11 = por %p1167_p10, %p1166_p9 }
  0x45   :  { %206 = vmatmul.mubr.f32.vlgmr.msra.gmra.mrb[0].mxu0 %v29_v38  ;;  %1059 = vmatpush3.bf16.msra.mxu1 %v1058_v30  ;;  %p1169_p12 = pnand %p1168_p11, %p1162_p8 }
  0x46   :  { %777 = vmatprep.mubr.msk.f32.mxu0 %vm92_vm0, %v32_v39  ;;  %1060 = vmatprep.subr.bf16.mxu1 %v1190_v0 }
  0x49   :  { %211 = vmatmul.mubr.f32.gmra.mrb[2].mxu0 %v31_v40 }
  0x4a   :  { %778 = vmatprep.mubr.msk.f32.mxu0 %vm92_vm0, %v34_v41 }
  0x4d   :  { %216 = vmatmul.mubr.f32.gmra.mrb[4].mxu0 %v33_v42 }
  0x4e   :  { %779 = vmatprep.mubr.msk.f32.mxu0 %vm92_vm0, %v36_v43  ;;  %v1377_v43 = vld [vmem:[#allocation2] sm:$0xff] }
  0x51   :  { %221 = vmatmul.mubr.f32.gmra.mrb[6].mxu0 %v35_v44  ;;  %v1379_v44 = vld [vmem:[#allocation2 + $0x8] sm:$0xff] }
  0x52   :  { %780 = vmatprep.mubr.msk.f32.mxu0 %vm92_vm0, %v38_v45 }
  0x55   :  { %226 = vmatmul.mubr.f32.gmra.mrb[8].mxu0 %v37_v46 }
  0x56   :  { %781 = vmatprep.mubr.msk.f32.mxu0 %vm92_vm0, %v40_v47 }
  0x59   :  { %231 = vmatmul.mubr.f32.gmra.mrb[10].mxu0 %v39_v48 }
  0x5a   :  { %782 = vmatprep.mubr.msk.f32.mxu0 %vm92_vm0, %v42_v49 }
  0x5d   :  { %236 = vmatmul.mubr.f32.gmra.mrb[12].mxu0 %v41_v50 }
  0x5e   :  { %783 = vmatprep.mubr.msk.f32.mxu0 %vm92_vm0, %v44_v51 }
  0x61   :  { %241 = vmatmul.mubr.f32.gmra.mrb[14].mxu0 %v43_v52 }
  0x62   :  { %784 = vmatprep.mubr.msk.f32.mxu0 %vm92_vm0, %v46_v53 }
  0x65   :  { %246 = vmatmul.mubr.f32.gmra.mrb[16].mxu0 %v45_v54 }
  0x66   :  { %785 = vmatprep.mubr.msk.f32.mxu0 %vm92_vm0, %v48_v55 }
  0x69   :  { %251 = vmatmul.mubr.f32.gmra.mrb[18].mxu0 %v47_v56 }
  0x6a   :  { %786 = vmatprep.mubr.msk.f32.mxu0 %vm92_vm0, %v50_v57 }
  0x6d   :  { %256 = vmatmul.mubr.f32.gmra.mrb[20].mxu0 %v49_v58 }
  0x6e   :  { %787 = vmatprep.mubr.msk.f32.mxu0 %vm92_vm0, %v52_v59 }
  0x71   :  { %261 = vmatmul.mubr.f32.gmra.mrb[22].mxu0 %v51_v60 }
  0x72   :  { %788 = vmatprep.mubr.msk.f32.mxu0 %vm92_vm0, %v54_v61 }
  0x75   :  { %266 = vmatmul.mubr.f32.gmra.mrb[24].mxu0 %v53_v62 }
  0x76   :  { %789 = vmatprep.mubr.msk.f32.mxu0 %vm92_vm0, %v56_v63 }
  0x79   :  { %271 = vmatmul.mubr.f32.gmra.mrb[26].mxu0 %v55_v1 }
  0x7a   :  { %790 = vmatprep.mubr.msk.f32.mxu0 %vm92_vm0, %v58_v2 }
  0x7d   :  { %276 = vmatmul.mubr.f32.gmra.mrb[28].mxu0 %v57_v3 }
  0x7e   :  { %791 = vmatprep.mubr.msk.f32.mxu0 %vm92_vm0, %v60_v4 }
  0x81   :  { %281 = vmatmul.mubr.f32.gmra.mrb[30].mxu0 %v59_v5 }
  0x82   :  { %997 = vmatprep.mubr.msk.f32.mxu0 %vm1191_vm1, %v1192_v29 }
 0x118   :  { %v207_v36 = vpop.f32.mrb[0].mxu0 }
 0x119   :  { %v208_v37 = vadd.f32 %v207_v36, %v1373_v35  ;;  %v209_v38 = vpop.f32.mrb[1].mxu0 }
 0x11b   :  { %v286_v40 = vmax.f32 %v208_v37, 0.0 }
 0x11c   :  { %v212_v39 = vpop.f32.mrb[2].mxu0 }
 0x11d   :  { %v213_v41 = vadd.f32 %v212_v39, %v1373_v35  ;;  %v214_v42 = vpop.f32.mrb[3].mxu0  ;;  %v302_v47 = vmul.f32 %v286_v40, %v1377_v43 }
 0x11f   :  { %v287_v45 = vmax.f32 %v213_v41, 0.0 }
 0x120   :  { %v217_v46 = vpop.f32.mrb[4].mxu0 }
 0x121   :  { %v303_v48 = vmul.f32 %v287_v45, %v1379_v44  ;;  %v218_v49 = vadd.f32 %v217_v46, %v1373_v35  ;;  %v219_v50 = vpop.f32.mrb[5].mxu0 }
 0x123   :  { %v318_v51 = vmax.f32 %v302_v47, %v303_v48  ;;  %v288_v54 = vmax.f32 %v218_v49, 0.0 }
 0x124   :  { %v222_v52 = vpop.f32.mrb[6].mxu0 }
 0x125   :  { %v319_v53 = vrot.slane %v318_v51, 4  ;;  %v223_v55 = vadd.f32 %v222_v52, %v1373_v35  ;;  %v224_v56 = vpop.f32.mrb[7].mxu0  ;;  %v304_v60 = vmul.f32 %v288_v54, %v1377_v43 }
 0x127   :  { %v320_v57 = vmax.f32 %v318_v51, %v319_v53  ;;  %v289_v58 = vmax.f32 %v223_v55, 0.0 }
 0x128   :  { %v227_v59 = vpop.f32.mrb[8].mxu0 }
 0x129   :  { %v305_v61 = vmul.f32 %v289_v58, %v1379_v44  ;;  %v228_v62 = vadd.f32 %v227_v59, %v1373_v35  ;;  %v229_v63 = vpop.f32.mrb[9].mxu0  ;;  %v321_v1 = vrot.slane %v320_v57, 2 }
 0x12b   :  { %v325_v2 = vmax.f32 %v304_v60, %v305_v61  ;;  %v290_v5 = vmax.f32 %v228_v62, 0.0  ;;  %v322_v8 = vmax.f32 %v320_v57, %v321_v1 }
 0x12c   :  { %v232_v3 = vpop.f32.mrb[10].mxu0 }
 0x12d   :  { %v326_v4 = vrot.slane %v325_v2, 4  ;;  %v233_v6 = vadd.f32 %v232_v3, %v1373_v35  ;;  %v234_v7 = vpop.f32.mrb[11].mxu0  ;;  %v306_v13 = vmul.f32 %v290_v5, %v1377_v43  ;;  %v323_v17 = vrot.slane %v322_v8, 1 }
 0x12f   :  { %v327_v9 = vmax.f32 %v325_v2, %v326_v4  ;;  %v291_v10 = vmax.f32 %v233_v6, 0.0  ;;  %v324_v26 = vmax.f32 %v322_v8, %v323_v17 }
 0x130   :  { %v237_v11 = vpop.f32.mrb[12].mxu0 }
 0x131   :  { %v328_v12 = vrot.slane %v327_v9, 2  ;;  %v307_v14 = vmul.f32 %v291_v10, %v1379_v44  ;;  %v238_v15 = vadd.f32 %v237_v11, %v1373_v35  ;;  %v239_v16 = vpop.f32.mrb[13].mxu0 }
 0x133   :  { %v329_v18 = vmax.f32 %v327_v9, %v328_v12  ;;  %v332_v19 = vmax.f32 %v306_v13, %v307_v14  ;;  %v292_v20 = vmax.f32 %v238_v15, 0.0 }
 0x134   :  { %v242_v21 = vpop.f32.mrb[14].mxu0 }
 0x135   :  { %v330_v22 = vrot.slane %v329_v18, 1  ;;  %v333_v23 = vrot.slane %v332_v19, 4  ;;  %v243_v24 = vadd.f32 %v242_v21, %v1373_v35  ;;  %v244_v25 = vpop.f32.mrb[15].mxu0  ;;  %v308_v31 = vmul.f32 %v292_v20, %v1377_v43 }
 0x137   :  { %v331_v27 = vmax.f32 %v329_v18, %v330_v22  ;;  %v334_v28 = vmax.f32 %v332_v19, %v333_v23  ;;  %v293_v30 = vmax.f32 %v243_v24, 0.0 }
 0x138   :  { %v247_v33 = vpop.f32.mrb[16].mxu0 }
 0x139   :  { %v335_v36 = vrot.slane %v334_v28, 2  ;;  %v309_v37 = vmul.f32 %v293_v30, %v1379_v44  ;;  %v248_v38 = vadd.f32 %v247_v33, %v1373_v35  ;;  %v249_v39 = vpop.f32.mrb[17].mxu0  ;;  %v403_v40 = vsel %vm402_vm2, %v331_v27, %v324_v26 }
 0x13b   :  { %v336_v41 = vmax.f32 %v334_v28, %v335_v36  ;;  %v339_v42 = vmax.f32 %v308_v31, %v309_v37  ;;  %v294_v45 = vmax.f32 %v248_v38, 0.0 }
 0x13c   :  { %v252_v46 = vpop.f32.mrb[18].mxu0 }
 0x13d   :  { %v337_v47 = vrot.slane %v336_v41, 1  ;;  %v340_v48 = vrot.slane %v339_v42, 4  ;;  %v253_v49 = vadd.f32 %v252_v46, %v1373_v35  ;;  %v254_v50 = vpop.f32.mrb[19].mxu0  ;;  %v310_v54 = vmul.f32 %v294_v45, %v1377_v43 }
 0x13f   :  { %v338_v51 = vmax.f32 %v336_v41, %v337_v47  ;;  %v341_v52 = vmax.f32 %v339_v42, %v340_v48  ;;  %v295_v53 = vmax.f32 %v253_v49, 0.0 }
 0x140   :  { %v257_v55 = vpop.f32.mrb[20].mxu0 }
 0x141   :  { %v342_v56 = vrot.slane %v341_v52, 2  ;;  %v311_v57 = vmul.f32 %v295_v53, %v1379_v44  ;;  %v258_v58 = vadd.f32 %v257_v55, %v1373_v35  ;;  %v259_v59 = vpop.f32.mrb[21].mxu0  ;;  %v405_v60 = vsel %vm404_vm3, %v338_v51, %v403_v40 }
 0x143   :  { %v343_v61 = vmax.f32 %v341_v52, %v342_v56  ;;  %v346_v62 = vmax.f32 %v310_v54, %v311_v57  ;;  %v296_v63 = vmax.f32 %v258_v58, 0.0 }
 0x144   :  { %v262_v1 = vpop.f32.mrb[22].mxu0 }
 0x145   :  { %v344_v2 = vrot.slane %v343_v61, 1  ;;  %v347_v3 = vrot.slane %v346_v62, 4  ;;  %v263_v4 = vadd.f32 %v262_v1, %v1373_v35  ;;  %v264_v5 = vpop.f32.mrb[23].mxu0  ;;  %v312_v9 = vmul.f32 %v296_v63, %v1377_v43  ;;  %v488_v63 = vld [vmem:[#allocation2 + $0x150] sm:$0xff]  ;;  %v489_v1 = vld [vmem:[#allocation2 + $0x158] sm:$0xff] }
 0x146   :  { %v491_v5 = vld [vmem:[#allocation2 + $0x168] sm:$0xff] }
 0x147   :  { %v345_v6 = vmax.f32 %v343_v61, %v344_v2  ;;  %v348_v7 = vmax.f32 %v346_v62, %v347_v3  ;;  %v297_v8 = vmax.f32 %v263_v4, 0.0  ;;  %v1061_v4 = vpack.c.bf16 %v489_v1, %v488_v63  ;;  %v673_v63 = vld [vmem:[#allocation2 + $0x268] sm:$0xff] }
 0x148   :  { %v267_v10 = vpop.f32.mrb[24].mxu0 }
 0x149   :  { %v349_v11 = vrot.slane %v348_v7, 2  ;;  %v313_v12 = vmul.f32 %v297_v8, %v1379_v44  ;;  %v268_v13 = vadd.f32 %v267_v10, %v1373_v35  ;;  %v269_v14 = vpop.f32.mrb[25].mxu0  ;;  %v407_v15 = vsel %vm406_vm4, %v345_v6, %v405_v60  ;;  %v493_v8 = vld [vmem:[#allocation2 + $0x178] sm:$0xff]  ;;  %v494_v10 = vld [vmem:[#allocation2 + $0x180] sm:$0xff] }
 0x14a   :  { %v497_v14 = vld [vmem:[#allocation2 + $0x198] sm:$0xff] }
 0x14b   :  { %v350_v16 = vmax.f32 %v348_v7, %v349_v11  ;;  %v353_v17 = vmax.f32 %v312_v9, %v313_v12  ;;  %v298_v18 = vmax.f32 %v268_v13, 0.0  ;;  %v492_v7 = vld [vmem:[#allocation2 + $0x170] sm:$0xff]  ;;  %v495_v11 = vld [vmem:[#allocation2 + $0x188] sm:$0xff] }
 0x14c   :  { %v272_v19 = vpop.f32.mrb[26].mxu0  ;;  %v1067_v9 = vpack.c.bf16 %v493_v8, %v492_v7  ;;  %v1070_v12 = vpack.c.bf16 %v495_v11, %v494_v10  ;;  %v496_v13 = vld [vmem:[#allocation2 + $0x190] sm:$0xff]  ;;  %v679_v7 = vld [vmem:[#allocation2 + $0x298] sm:$0xff]  ;;  %v681_v10 = vld [vmem:[#allocation2 + $0x2a8] sm:$0xff] }
 0x14d   :  { %v351_v20 = vrot.slane %v350_v16, 1  ;;  %v354_v21 = vrot.slane %v353_v17, 4  ;;  %v273_v22 = vadd.f32 %v272_v19, %v1373_v35  ;;  %v274_v23 = vpop.f32.mrb[27].mxu0  ;;  %v314_v27 = vmul.f32 %v298_v18, %v1377_v43  ;;  %v500_v19 = vld [vmem:[#allocation2 + $0x1b0] sm:$0xff] }
 0x14e   :  { %v503_v23 = vld [vmem:[#allocation2 + $0x1c8] sm:$0xff] }
 0x14f   :  { %v352_v24 = vmax.f32 %v350_v16, %v351_v20  ;;  %v355_v25 = vmax.f32 %v353_v17, %v354_v21  ;;  %v299_v26 = vmax.f32 %v273_v22, 0.0  ;;  %v498_v16 = vld [vmem:[#allocation2 + $0x1a0] sm:$0xff]  ;;  %v499_v17 = vld [vmem:[#allocation2 + $0x1a8] sm:$0xff]  ;;  %v501_v20 = vld [vmem:[#allocation2 + $0x1b8] sm:$0xff] }
 0x150   :  { %v277_v28 = vpop.f32.mrb[28].mxu0  ;;  %v1076_v18 = vpack.c.bf16 %v499_v17, %v498_v16  ;;  %v1079_v21 = vpack.c.bf16 %v501_v20, %v500_v19  ;;  %v502_v22 = vld [vmem:[#allocation2 + $0x1c0] sm:$0xff]  ;;  %v685_v16 = vld [vmem:[#allocation2 + $0x2c8] sm:$0xff] }
 0x151   :  { %v356_v30 = vrot.slane %v355_v25, 2  ;;  %v315_v31 = vmul.f32 %v299_v26, %v1379_v44  ;;  %v278_v33 = vadd.f32 %v277_v28, %v1373_v35  ;;  %v279_v36 = vpop.f32.mrb[29].mxu0  ;;  %v409_v37 = vsel %vm408_vm5, %v352_v24, %v407_v15  ;;  %v580_v28 = vld [vmem:[#allocation2 + $0x1d8] sm:$0xff] }
 0x152   :  { %v1073_v15 = vpack.c.bf16 %v497_v14, %v496_v13  ;;  %v1082_v24 = vpack.c.bf16 %v503_v23, %v502_v22  ;;  %v683_v13 = vld [vmem:[#allocation2 + $0x2b8] sm:$0xff] }
 0x153   :  { %v357_v38 = vmax.f32 %v355_v25, %v356_v30  ;;  %v360_v39 = vmax.f32 %v314_v27, %v315_v31  ;;  %v300_v45 = vmax.f32 %v278_v33, 0.0  ;;  %v392_v25 = vsub.s32 1, %v1364_v32  ;;  %v579_v27 = vld [vmem:[#allocation2 + $0x1d0] sm:$0xff] }
 0x154   :  { %v282_v40 = vpop.f32.mrb[30].mxu0  ;;  %v1085_v36 = vpack.c.bf16 %v580_v28, %v579_v27 }
 0x155   :  { %v358_v41 = vrot.slane %v357_v38, 1  ;;  %v361_v42 = vrot.slane %v360_v39, 4  ;;  %v283_v46 = vadd.f32 %v282_v40, %v1373_v35  ;;  %v284_v47 = vpop.f32.mrb[31].mxu0  ;;  %v316_v52 = vmul.f32 %v300_v45, %v1377_v43  ;;  %v490_v43 = vld [vmem:[#allocation2 + $0x160] sm:$0xff] }
 0x156   :  { %v1064_v6 = vpack.c.bf16 %v491_v5, %v490_v43  ;;  %v393_v26 = vrot.slane %v1370_v34, %v392_v25  ;;  %v586_v47 = vld [vmem:[#allocation2 + $0x208] sm:$0xff]  ;;  %v676_v43 = vld [vmem:[#allocation2 + $0x280] sm:$0xff] }
 0x157   :  { %v362_v48 = vmax.f32 %v360_v39, %v361_v42  ;;  %v301_v49 = vmax.f32 %v283_v46, 0.0  ;;  %v359_v50 = vmax.f32 %v357_v38, %v358_v41  ;;  %v581_v38 = vld [vmem:[#allocation2 + $0x1e0] sm:$0xff]  ;;  %v582_v39 = vld [vmem:[#allocation2 + $0x1e8] sm:$0xff]  ;;  %v583_v41 = vld [vmem:[#allocation2 + $0x1f0] sm:$0xff] }
 0x158   :  { %v1088_v40 = vpack.c.bf16 %v582_v39, %v581_v38  ;;  %v584_v42 = vld [vmem:[#allocation2 + $0x1f8] sm:$0xff]  ;;  %v585_v46 = vld [vmem:[#allocation2 + $0x200] sm:$0xff]  ;;  %v677_v5 = vld [vmem:[#allocation2 + $0x288] sm:$0xff] }
 0x159   :  { %v363_v51 = vrot.slane %v362_v48, 2  ;;  %v317_v53 = vmul.f32 %v301_v49, %v1379_v44  ;;  %v411_v54 = vsel %vm410_vm6, %v359_v50, %v409_v37  ;;  %v1091_v45 = vpack.c.bf16 %v584_v42, %v583_v41  ;;  %v587_v49 = vld [vmem:[#allocation2 + $0x210] sm:$0xff]  ;;  %v588_v50 = vld [vmem:[#allocation2 + $0x218] sm:$0xff] }
 0x15b   :  { %v364_v55 = vmax.f32 %v362_v48, %v363_v51  ;;  %v367_v56 = vmax.f32 %v316_v52, %v317_v53  ;;  %v1094_v48 = vpack.c.bf16 %v586_v47, %v585_v46  ;;  %v1097_v51 = vpack.c.bf16 %v588_v50, %v587_v49  ;;  %v590_v52 = vld [vmem:[#allocation2 + $0x228] sm:$0xff] }
 0x15d   :  { %v368_v57 = vrot.slane %v367_v56, 4  ;;  %v365_v58 = vrot.slane %v364_v55, 1 }
 0x15f   :  { %v369_v59 = vmax.f32 %v367_v56, %v368_v57  ;;  %v366_v60 = vmax.f32 %v364_v55, %v365_v58  ;;  %v592_v55 = vld [vmem:[#allocation2 + $0x238] sm:$0xff]  ;;  %v593_v57 = vld [vmem:[#allocation2 + $0x240] sm:$0xff]  ;;  %v594_v58 = vld [vmem:[#allocation2 + $0x248] sm:$0xff] }
 0x161   :  { %v370_v61 = vrot.slane %v369_v59, 2  ;;  %v413_v35 = vsel %vm412_vm7, %v366_v60, %v411_v54  ;;  %v591_v54 = vld [vmem:[#allocation2 + $0x230] sm:$0xff] }
 0x162   :  { %v1103_v56 = vpack.c.bf16 %v592_v55, %v591_v54  ;;  %v670_v60 = vld [vmem:[#allocation2 + $0x250] sm:$0xff] }
 0x163   :  { %v371_v62 = vmax.f32 %v369_v59, %v370_v61  ;;  %v1106_v59 = vpack.c.bf16 %v594_v58, %v593_v57  ;;  %v671_v61 = vld [vmem:[#allocation2 + $0x258] sm:$0xff] }
 0x165   :  { %v372_v2 = vrot.slane %v371_v62, 1 }
 0x167   :  { %v373_v3 = vmax.f32 %v371_v62, %v372_v2  ;;  %v1109_v62 = vpack.c.bf16 %v671_v61, %v670_v60  ;;  %v674_v2 = vld [vmem:[#allocation2 + $0x270] sm:$0xff] }
 0x169   :  { %v415_v44 = vsel %vm414_vm8, %v373_v3, %v413_v35  ;;  %v672_v35 = vld [vmem:[#allocation2 + $0x260] sm:$0xff]  ;;  %1110 = vmatpush3.bf16.msra.mxu0 %v1109_v62  ;;  %v675_v3 = vld [vmem:[#allocation2 + $0x278] sm:$0xff] }
 0x16a   :  { %893 = vmatmul.mubr.f32.vlgmr.msra.gmra.mrb[0].mxu1 %v415_v44  ;;  %v1112_v1 = vpack.c.bf16 %v673_v63, %v672_v35  ;;  %1111 = vmatprep.subr.bf16.mxu0 %v1190_v0  ;;  %v1118_v44 = vpack.c.bf16 %v677_v5, %v676_v43 }
 0x16b   :  { %1062 = vmatpush3.bf16.msra.mxu1 %v1061_v4  ;;  %927 = vmatprep.mubr.msk.f32.mxu1 %vm1191_vm1, %v1192_v29  ;;  %v1115_v4 = vpack.c.bf16 %v675_v3, %v674_v2 }
 0x16c   :  { %1063 = vmatprep.subr.bf16.mxu1 %v1190_v0 }
 0x16d   :  { %1113 = vmatpush3.bf16.msra.mxu0 %v1112_v1 }
 0x16e   :  { %1114 = vmatprep.subr.bf16.mxu0 %v1190_v0 }
 0x16f   :  { %1065 = vmatpush3.bf16.msra.mxu1 %v1064_v6  ;;  %v678_v6 = vld [vmem:[#allocation2 + $0x290] sm:$0xff] }
 0x170   :  { %1066 = vmatprep.subr.bf16.mxu1 %v1190_v0  ;;  %v1121_v8 = vpack.c.bf16 %v679_v7, %v678_v6 }
 0x171   :  { %1116 = vmatpush3.bf16.msra.mxu0 %v1115_v4 }
 0x172   :  { %1117 = vmatprep.subr.bf16.mxu0 %v1190_v0 }
 0x173   :  { %1068 = vmatpush3.bf16.msra.mxu1 %v1067_v9  ;;  %v680_v9 = vld [vmem:[#allocation2 + $0x2a0] sm:$0xff] }
 0x174   :  { %1069 = vmatprep.subr.bf16.mxu1 %v1190_v0  ;;  %v1124_v11 = vpack.c.bf16 %v681_v10, %v680_v9 }
 0x175   :  { %1119 = vmatpush3.bf16.msra.mxu0 %v1118_v44 }
 0x176   :  { %1120 = vmatprep.subr.bf16.mxu0 %v1190_v0 }
 0x177   :  { %1071 = vmatpush3.bf16.msra.mxu1 %v1070_v12  ;;  %v682_v12 = vld [vmem:[#allocation2 + $0x2b0] sm:$0xff] }
 0x178   :  { %1072 = vmatprep.subr.bf16.mxu1 %v1190_v0  ;;  %v1127_v14 = vpack.c.bf16 %v683_v13, %v682_v12 }
 0x179   :  { %1122 = vmatpush3.bf16.msra.mxu0 %v1121_v8 }
 0x17a   :  { %1123 = vmatprep.subr.bf16.mxu0 %v1190_v0 }
 0x17b   :  { %1074 = vmatpush3.bf16.msra.mxu1 %v1073_v15  ;;  %v684_v15 = vld [vmem:[#allocation2 + $0x2c0] sm:$0xff] }
 0x17c   :  { %1075 = vmatprep.subr.bf16.mxu1 %v1190_v0  ;;  %v1130_v17 = vpack.c.bf16 %v685_v16, %v684_v15 }
 0x17d   :  { %1125 = vmatpush3.bf16.msra.mxu0 %v1124_v11 }
 0x17e   :  { %1126 = vmatprep.subr.bf16.mxu0 %v1190_v0 }
 0x17f   :  { %1077 = vmatpush3.bf16.msra.mxu1 %v1076_v18  ;;  %v506_v18 = vsub.s32 2, %v1364_v32 }
 0x180   :  { %1078 = vmatprep.subr.bf16.mxu1 %v1190_v0 }
 0x181   :  { %1128 = vmatpush3.bf16.msra.mxu0 %v1127_v14  ;;  %v507_v19 = vrot.slane %v1370_v34, %v506_v18 }
 0x182   :  { %1129 = vmatprep.subr.bf16.mxu0 %v1190_v0 }
 0x183   :  { %1080 = vmatpush3.bf16.msra.mxu1 %v1079_v21 }
 0x184   :  { %1081 = vmatprep.subr.bf16.mxu1 %v1190_v0 }
 0x185   :  { %1131 = vmatpush3.bf16.msra.mxu0 %v1130_v17 }
 0x187   :  { %1083 = vmatpush3.bf16.msra.mxu1 %v1082_v24  ;;  %v597_v24 = vsub.s32 3, %v1364_v32 }
 0x188   :  { %1084 = vmatprep.subr.bf16.mxu1 %v1190_v0 }
 0x189   :  { %v598_v25 = vrot.slane %v1370_v34, %v597_v24 }
 0x23d   :  { %v483_v30 = vpop.f32.mrb[0].mxu1 }
 0x23e   :  { %v484_v31 = vadd.f32 %v483_v30, %v393_v26  ;;  %v894_v33 = vpop.f32.mrb[1].mxu1 }
 0x240   :  { %v487_v37 = vmax.f32 %v484_v31, 0.0 }
 0x242   :  { %928 = vmatmul.mubr.f32.vlgmr.msra.gmra.mrb[2].mxu1 %v487_v37 }
 0x243   :  { %1086 = vmatpush3.bf16.msra.mxu1 %v1085_v36  ;;  %962 = vmatprep.mubr.msk.f32.mxu1 %vm1191_vm1, %v1192_v29  ;;  %v589_v29 = vld [vmem:[#allocation2 + $0x220] sm:$0xff] }
 0x244   :  { %1087 = vmatprep.subr.bf16.mxu1 %v1190_v0  ;;  %v1100_v53 = vpack.c.bf16 %v590_v52, %v589_v29 }
 0x247   :  { %1089 = vmatpush3.bf16.msra.mxu1 %v1088_v40 }
 0x248   :  { %1090 = vmatprep.subr.bf16.mxu1 %v1190_v0 }
 0x24b   :  { %1092 = vmatpush3.bf16.msra.mxu1 %v1091_v45 }
 0x24c   :  { %1093 = vmatprep.subr.bf16.mxu1 %v1190_v0 }
 0x24f   :  { %1095 = vmatpush3.bf16.msra.mxu1 %v1094_v48 }
 0x250   :  { %1096 = vmatprep.subr.bf16.mxu1 %v1190_v0 }
 0x253   :  { %1098 = vmatpush3.bf16.msra.mxu1 %v1097_v51 }
 0x254   :  { %1099 = vmatprep.subr.bf16.mxu1 %v1190_v0 }
 0x257   :  { %1101 = vmatpush3.bf16.msra.mxu1 %v1100_v53 }
 0x258   :  { %1102 = vmatprep.subr.bf16.mxu1 %v1190_v0 }
 0x25b   :  { %1104 = vmatpush3.bf16.msra.mxu1 %v1103_v56 }
 0x25c   :  { %1105 = vmatprep.subr.bf16.mxu1 %v1190_v0  ;;  %v688_v0 = vsub.s32 4, %v1364_v32 }
 0x25e   :  { %v689_v31 = vrot.slane %v1370_v34, %v688_v0 }
 0x25f   :  { %1107 = vmatpush3.bf16.msra.mxu1 %v1106_v59 }
 0x315   :  { %v574_v20 = vpop.f32.mrb[2].mxu1 }
 0x316   :  { %v575_v21 = vadd.f32 %v574_v20, %v507_v19  ;;  %v929_v22 = vpop.f32.mrb[3].mxu1 }
 0x318   :  { %v578_v23 = vmax.f32 %v575_v21, 0.0 }
 0x31a   :  { %963 = vmatmul.mubr.f32.vlgmr.msra.gmra.mrb[4].mxu1 %v578_v23 }
 0x3ed   :  { %v665_v26 = vpop.f32.mrb[4].mxu1 }
 0x3ee   :  { %v666_v27 = vadd.f32 %v665_v26, %v598_v25  ;;  %v964_v28 = vpop.f32.mrb[5].mxu1 }
 0x3f0   :  { %v669_v30 = vmax.f32 %v666_v27, 0.0 }
 0x3f2   :  { %998 = vmatmul.mubr.f32.vlgmr.msra.gmra.mrb[32].mxu0 %v669_v30 }
 0x4c5   :  { %v756_v33 = vpop.f32.mrb[32].mxu0 }
 0x4c6   :  { %v757_v36 = vadd.f32 %v756_v33, %v689_v31  ;;  %v999_v37 = vpop.f32.mrb[33].mxu0 }
 0x4c8   :  { %760 = vst [vmem:[#allocation5] sm:$0xff] %v757_v36 }
 0x4c9   :  { %1172 = shalt.err (!%p1169_p12)
}
 0x4ca   :  { %s1173_s11 = scalar_lea.hbm %s1460_s3, 128 }
 0x4cb   :  { %p1174_p13 = scmp.ne.s32.totalorder %s1460_s3, %s1173_s11  ;;  %p1177_p0 = scmp.lt.u32.totalorder %s1173_s11, %s1460_s3 }
 0x4cd   :  { %p1179_p1 = pnand %p1177_p0, %p1174_p13 }
 0x4cf   :  { %1182 = shalt.err (!%p1179_p1)
}
 0x4d0   :  { %770 = dma.vmem_to_hbm [thread:$0]  %s768_s7, 128, %s1460_s3, [#allocation4]  }
 0x4d1   :  { %1185 = dma.done.wait [#allocation4], 128  }
 0x4d2   :  { %1186 = vsyncadd [#allocation4], 4294967168 }
 0x4d3   :  { %774 = vsyncpa [#allocation3], 1 }
 0x4d4   :  { %775 = vsyncpa [#allocation4], 1 }

</bundles_post_ra>
